<compile_context>
chip_gen: v7x
topology: tpu7x:2x2x1
jax: 0.10.0
libtpu: 0.0.40
codegen_flags: <defaults>
</compile_context>

<pallas_src>
import functools

import jax
import jax.numpy as jnp
import numpy as np
from jax import lax
from jax.experimental import pallas as pl
from jax.experimental.pallas import tpu as pltpu

EXPANSION = 4
BN_EPS = 1e-5


# ----------------------------------------------------------------------------
# Kernel A: fused  relu(bn1(x)) @ w1 -> relu(bn2(.))       (1x1 conv1 path)
# ----------------------------------------------------------------------------
def _front_kernel(x_ref, s1_ref, b1_ref, w1_ref, s2_ref, b2_ref, a2_ref):
    # BN + ReLU in f32 on the VPU, then hand bf16 operands to the MXU.
    a = jnp.maximum(x_ref[...] * s1_ref[...] + b1_ref[...], 0.0)
    a = a.astype(jnp.bfloat16)
    z = jnp.dot(a, w1_ref[...], preferred_element_type=jnp.float32)
    a2_ref[...] = jnp.maximum(z * s2_ref[...] + b2_ref[...],
                              0.0).astype(a2_ref.dtype)


def _pick_tm(M, Cin, Cout, budget=10 * 1024 * 1024):
    """Largest row tile (1024 -> 128) whose double-buffered footprint fits the
    budget (kept under v5e's 16 MiB scoped-VMEM default with headroom)."""
    tm = 1024
    while tm > 128:
        need = (2 * tm * Cin * 4        # x tile, f32, double-buffered
                + 2 * tm * Cout * 2     # a2 tile, bf16, double-buffered
                + 2 * Cin * Cout * 2    # weight block (double-buffered)
                + 8 * Cin * 4)          # bn scale/shift
        if need <= budget:
            break
        tm //= 2
    return min(tm, M)


def front(x2, s1, b1, w1, s2, b2):
    """x2: (M, Cin) f32 -> a2 bf16 (M, planes)."""
    M, Cin = x2.shape
    planes = w1.shape[1]
    tm = _pick_tm(M, Cin, planes)
    return pl.pallas_call(
        _front_kernel,
        out_shape=jax.ShapeDtypeStruct((M, planes), jnp.bfloat16),
        grid=(pl.cdiv(M, tm),),
        in_specs=[pl.BlockSpec((tm, Cin), lambda i: (i, 0)),
                  pl.BlockSpec((1, Cin), lambda i: (0, 0)),
                  pl.BlockSpec((1, Cin), lambda i: (0, 0)),
                  pl.BlockSpec((Cin, planes), lambda i: (0, 0)),
                  pl.BlockSpec((1, planes), lambda i: (0, 0)),
                  pl.BlockSpec((1, planes), lambda i: (0, 0))],
        out_specs=pl.BlockSpec((tm, planes), lambda i: (i, 0)),
        compiler_params=pltpu.CompilerParams(dimension_semantics=("parallel",)),
    )(x2, s1.reshape(1, Cin), b1.reshape(1, Cin), w1,
      s2.reshape(1, planes), b2.reshape(1, planes))


# ----------------------------------------------------------------------------
# Kernel B: 3x3 conv2 (stride s, halo in VMEM scratch) fused with
#           bn3 + relu + conv3 (1x1) + shortcut (projection or identity).
# ----------------------------------------------------------------------------
def _tail_kernel(H, W, stride, th_o, has_sc, *refs):
    if has_sc:
        (a2_ref, w2_ref, s3_ref, b3_ref, w3_ref, x_ref,
         s1_ref, b1_ref, wsc_ref, o_ref, pad_ref) = refs
    else:
        (a2_ref, w2_ref, s3_ref, b3_ref, w3_ref, x_ref,
         o_ref, pad_ref) = refs

    C = w2_ref.shape[-1]
    Cout = w3_ref.shape[-1]
    Wo = W // stride
    r = pl.program_id(1)

    # Build the zero-padded a2 image once per image.  The image lives at
    # [1:H+1, 2:W+2]; the 2-column side strips keep every store window
    # pair-aligned for packed bf16.  Only the thin border is zeroed (the
    # interior is fully overwritten by the image copy).
    @pl.when(r == 0)
    def _fill():
        pad_ref[1:H + 1, 2:W + 2, :] = a2_ref[...].astype(pad_ref.dtype)
        zrow = jnp.zeros((1, W + 4, C), pad_ref.dtype)
        pad_ref[0:1, :, :] = zrow
        pad_ref[H + 1:H + 2, :, :] = zrow
        zcol = jnp.zeros((H, 2, C), pad_ref.dtype)
        pad_ref[1:H + 1, 0:2, :] = zcol
        pad_ref[1:H + 1, W + 2:W + 4, :] = zcol

    row_base = pl.multiple_of(r * (th_o * stride), th_o * stride)

    # 3x3 conv2 as 9 shifted matmuls accumulated in f32 (stride handled by
    # reading only the kept rows/cols — no dense-then-subsample).
    acc = jnp.zeros((th_o * Wo, C), jnp.float32)
    for dy in range(3):
        for dx in range(3):
            if stride == 1:
                blk = pad_ref[pl.ds(row_base + dy, th_o),
                              pl.ds(dx + 1, Wo), :]
            else:
                blk = pad_ref[pl.ds(row_base + dy, th_o, stride=stride),
                              pl.ds(dx + 1, Wo, stride=stride), :]
            patch = blk.reshape(th_o * Wo, C)
            if patch.dtype != jnp.bfloat16:
                patch = patch.astype(jnp.bfloat16)
            acc = acc + jnp.dot(patch, w2_ref[dy * 3 + dx],
                                preferred_element_type=jnp.float32)

    # Fused epilogue: bn3 -> relu -> conv3 (1x1), y2 never leaves the chip.
    a3 = jnp.maximum(acc * s3_ref[...] + b3_ref[...], 0.0).astype(jnp.bfloat16)
    y3 = jnp.dot(a3, w3_ref[...], preferred_element_type=jnp.float32)

    # Shortcut computed in-kernel from x (no HBM round trip of sc).
    if stride == 1:
        x_kept = x_ref[...]
    else:
        x_kept = x_ref[pl.ds(0, th_o, stride=stride),
                       pl.ds(0, Wo, stride=stride), :]
    Cin = x_kept.shape[-1]
    x2 = x_kept.reshape(th_o * Wo, Cin)
    if has_sc:
        a_sc = jnp.maximum(x2 * s1_ref[...] + b1_ref[...],
                           0.0).astype(jnp.bfloat16)
        res = jnp.dot(a_sc, wsc_ref[...], preferred_element_type=jnp.float32)
    else:
        res = x2    # identity shortcut (stride == 1, Cin == Cout)

    o_ref[...] = (y3 + res).reshape(th_o, Wo, Cout).astype(o_ref.dtype)


def _pick_row_tile(Ho, Wo):
    """Largest divisor of Ho up to a target keeping th_o*Wo ~ 256 rows."""
    target = min(Ho, max(8, 256 // max(Wo, 1)))
    th = 1
    for d in range(1, target + 1):
        if Ho % d == 0:
            th = d
    if th < 4 and Ho * Wo <= 2048:
        th = Ho          # awkward Ho (e.g. prime): take the whole image
    return th


def conv2_tail(a2, x, w2, s3, b3, w3, stride=1, s1=None, b1=None, wsc=None):
    """a2: (N,H,W,C) bf16; x: (N,H,W,Cin) f32; w2: (9,C,C) bf16;
    w3: (C,Cout) bf16; wsc: (Cin,Cout) bf16 or None (identity shortcut).
    Returns (N, H//s, W//s, Cout) f32."""
    N, H, W, C = a2.shape
    Cin = x.shape[-1]
    Cout = w3.shape[1]
    Ho, Wo = H // stride, W // stride
    has_sc = wsc is not None
    th_o = _pick_row_tile(Ho, Wo)

    # bf16 halo scratch for the common aligned case; f32 fallback keeps the
    # strided (stride=2) / odd-W read paths on the proven 32-bit layout.
    pad_dtype = jnp.bfloat16 if (stride == 1 and W % 2 == 0) else jnp.float32

    in_specs = [
        pl.BlockSpec((None, H, W, C), lambda n, r: (n, 0, 0, 0)),
        pl.BlockSpec((9, C, C), lambda n, r: (0, 0, 0)),
        pl.BlockSpec((1, C), lambda n, r: (0, 0)),
        pl.BlockSpec((1, C), lambda n, r: (0, 0)),
        pl.BlockSpec((C, Cout), lambda n, r: (0, 0)),
        pl.BlockSpec((None, th_o * stride, W, Cin), lambda n, r: (n, r, 0, 0)),
    ]
    args = [a2, w2, s3.reshape(1, C), b3.reshape(1, C), w3, x]
    if has_sc:
        in_specs += [pl.BlockSpec((1, Cin), lambda n, r: (0, 0)),
                     pl.BlockSpec((1, Cin), lambda n, r: (0, 0)),
                     pl.BlockSpec((Cin, Cout), lambda n, r: (0, 0))]
        args += [s1.reshape(1, Cin), b1.reshape(1, Cin), wsc]

    kernel = functools.partial(_tail_kernel, H, W, stride, th_o, has_sc)
    return pl.pallas_call(
        kernel,
        out_shape=jax.ShapeDtypeStruct((N, Ho, Wo, Cout), jnp.float32),
        grid=(N, Ho // th_o),
        in_specs=in_specs,
        out_specs=pl.BlockSpec((None, th_o, Wo, Cout), lambda n, r: (n, r, 0, 0)),
        scratch_shapes=[pltpu.VMEM((H + 2, W + 4, C), pad_dtype)],
        compiler_params=pltpu.CompilerParams(
            dimension_semantics=("parallel", "arbitrary")),
    )(*args)


# ----------------------------------------------------------------------------
# Parameter init (deterministic; mirrors the PyTorch module's shapes).
# Conv weights stored bf16, ready for NHWC matmuls: 1x1 as (Cin, Cout),
# 3x3 as (9, Cin, Cout).  BN folded to f32 (scale, shift).
# ----------------------------------------------------------------------------
def init_params(key, in_planes, planes, stride):
    out_planes = EXPANSION * planes
    keys = jax.random.split(key, 16)

    def bn(kg, kb, km, kv, c):
        gamma = jax.random.uniform(kg, (c,), minval=0.5, maxval=1.5)
        beta = 0.1 * jax.random.normal(kb, (c,))
        mean = 0.1 * jax.random.normal(km, (c,))
        var = jax.random.uniform(kv, (c,), minval=0.5, maxval=1.5)
        scale = gamma / jnp.sqrt(var + BN_EPS)
        shift = beta - mean * scale
        return scale.astype(jnp.float32), shift.astype(jnp.float32)

    s1, b1 = bn(keys[0], keys[1], keys[2], keys[3], in_planes)
    s2, b2 = bn(keys[4], keys[5], keys[6], keys[7], planes)
    s3, b3 = bn(keys[8], keys[9], keys[10], keys[11], planes)

    w1 = (0.1 * jax.random.normal(keys[12], (in_planes, planes))).astype(jnp.bfloat16)
    w2 = (0.1 * jax.random.normal(keys[13], (9, planes, planes))).astype(jnp.bfloat16)
    w3 = (0.1 * jax.random.normal(keys[14], (planes, out_planes))).astype(jnp.bfloat16)

    p = dict(s1=s1, b1=b1, s2=s2, b2=b2, s3=s3, b3=b3, w1=w1, w2=w2, w3=w3)
    if stride != 1 or in_planes != out_planes:
        p['wsc'] = (0.1 * jax.random.normal(
            keys[15], (in_planes, out_planes))).astype(jnp.bfloat16)
    return p


# ----------------------------------------------------------------------------
# Full forward pass (Pallas kernels + host-side glue)
# ----------------------------------------------------------------------------
def preact_bottleneck_forward(x_nchw, params, stride=1):
    x = jnp.transpose(x_nchw, (0, 2, 3, 1)).astype(jnp.float32)   # NHWC
    N, H, W, Cin = x.shape
    planes = params['w1'].shape[1]
    out_planes = EXPANSION * planes
    has_sc = 'wsc' in params
    assert stride == 1 or has_sc, "stride != 1 requires a shortcut conv"
    assert H % stride == 0 and W % stride == 0
    if not has_sc:
        assert Cin == out_planes, "identity shortcut needs Cin == 4*planes"

    # Kernel A: conv1 path.
    a2 = front(x.reshape(N * H * W, Cin), params['s1'], params['b1'],
               params['w1'], params['s2'], params['b2'])
    a2 = a2.reshape(N, H, W, planes)

    # Kernel B: conv2 + bn3 + relu + conv3 + shortcut, all fused.
    out = conv2_tail(a2, x, params['w2'], params['s3'], params['b3'],
                     params['w3'], stride=stride,
                     s1=params['s1'] if has_sc else None,
                     b1=params['b1'] if has_sc else None,
                     wsc=params.get('wsc'))
    return jnp.transpose(out, (0, 3, 1, 2))   # back to NCHW


# ----------------------------------------------------------------------------
# Pure-JAX reference.  It applies bf16 rounding at exactly the points where
# the kernels cast for the MXU, so the comparison can be tight.
# ----------------------------------------------------------------------------
def reference_forward(x_nchw, params, stride=1):
    f32 = lambda t: t.astype(jnp.float32)
    bf16_round = lambda t: t.astype(jnp.bfloat16).astype(jnp.float32)

    x = jnp.transpose(x_nchw, (0, 2, 3, 1)).astype(jnp.float32)
    planes = params['w1'].shape[1]

    a = bf16_round(jnp.maximum(x * params['s1'] + params['b1'], 0.0))
    if 'wsc' in params:
        a_sc = a[:, ::stride, ::stride, :] if stride != 1 else a
        sc = jnp.einsum('nhwc,cd->nhwd', a_sc, f32(params['wsc']))
    else:
        sc = x

    y1 = jnp.einsum('nhwc,cd->nhwd', a, f32(params['w1']))
    a2 = bf16_round(jnp.maximum(y1 * params['s2'] + params['b2'], 0.0))
    w2 = f32(params['w2']).reshape(3, 3, planes, planes)
    y2 = lax.conv_general_dilated(a2, w2, (stride, stride), ((1, 1), (1, 1)),
                                  dimension_numbers=('NHWC', 'HWIO', 'NHWC'))
    a3 = bf16_round(jnp.maximum(y2 * params['s3'] + params['b3'], 0.0))
    y3 = jnp.einsum('nhwc,cd->nhwd', a3, f32(params['w3'])) + sc
    return jnp.transpose(y3, (0, 3, 1, 2))


if __name__ == "__main__":
    key = jax.random.PRNGKey(0)
    kx, kp1, kp2, kp3 = jax.random.split(key, 4)

    # Small config: in_planes=16, planes=8 -> out channels 32.
    N, in_planes, planes, Hs, Ws = 2, 16, 8, 16, 16
    x = jax.random.normal(kx, (N, in_planes, Hs, Ws), jnp.float32)   # NCHW

    # Case 1: stride=1 with a projection shortcut (in_planes != 4*planes).
    params1 = init_params(kp1, in_planes, planes, stride=1)
    out1 = jax.block_until_ready(preact_bottleneck_forward(x, params1, stride=1))
    ref1 = reference_forward(x, params1, stride=1)
    np.testing.assert_allclose(np.asarray(out1), np.asarray(ref1),
                               rtol=2e-3, atol=2e-3)
    assert out1.shape == (N, EXPANSION * planes, Hs, Ws)

    # Case 2: stride=2 downsampling block (shortcut fused into Kernel B).
    params2 = init_params(kp2, in_planes, planes, stride=2)
    out2 = jax.block_until_ready(preact_bottleneck_forward(x, params2, stride=2))
    ref2 = reference_forward(x, params2, stride=2)
    np.testing.assert_allclose(np.asarray(out2), np.asarray(ref2),
                               rtol=2e-3, atol=2e-3)
    assert out2.shape == (N, EXPANSION * planes, Hs // 2, Ws // 2)

    # Case 3: identity shortcut (in_planes == 4*planes, stride=1).
    x3 = jax.random.normal(kx, (N, EXPANSION * planes, Hs, Ws), jnp.float32)
    params3 = init_params(kp3, EXPANSION * planes, planes, stride=1)
    out3 = jax.block_until_ready(preact_bottleneck_forward(x3, params3, stride=1))
    ref3 = reference_forward(x3, params3, stride=1)
    np.testing.assert_allclose(np.asarray(out3), np.asarray(ref3),
                               rtol=2e-3, atol=2e-3)
    assert out3.shape == (N, EXPANSION * planes, Hs, Ws)

    print("KERNEL_OK")
</pallas_src>

<mosaic_0001>
module attributes {stable_mosaic.version = 11 : i64} {
  func.func @_front_kernel(%arg0: i32, %arg1: memref<512x16xf32, #tpu.memory_space<vmem>>, %arg2: memref<1x16xf32, #tpu.memory_space<vmem>>, %arg3: memref<1x16xf32, #tpu.memory_space<vmem>>, %arg4: memref<16x8xbf16, #tpu.memory_space<vmem>>, %arg5: memref<1x8xf32, #tpu.memory_space<vmem>>, %arg6: memref<1x8xf32, #tpu.memory_space<vmem>>, %arg7: memref<512x8xbf16, #tpu.memory_space<vmem>>) attributes {dimension_semantics = [#tpu.dimension_semantics<parallel>], iteration_bounds = array<i64: 1>, scalar_prefetch = 0 : i64, scratch_operands = 0 : i64, tpu.core_type = #tpu.core_type<tc>, window_params = [{transform_indices = @transform_0, window_bounds = array<i64: 512, 16>}, {pipeline_mode = #tpu.pipeline_mode<synchronous>, transform_indices = @transform_1, window_bounds = array<i64: 1, 16>}, {pipeline_mode = #tpu.pipeline_mode<synchronous>, transform_indices = @transform_2, window_bounds = array<i64: 1, 16>}, {pipeline_mode = #tpu.pipeline_mode<synchronous>, transform_indices = @transform_3, window_bounds = array<i64: 16, 8>}, {pipeline_mode = #tpu.pipeline_mode<synchronous>, transform_indices = @transform_4, window_bounds = array<i64: 1, 8>}, {pipeline_mode = #tpu.pipeline_mode<synchronous>, transform_indices = @transform_5, window_bounds = array<i64: 1, 8>}, {transform_indices = @transform_6, window_bounds = array<i64: 512, 8>}]} {
    %c0 = arith.constant 0 : index
    %c0_0 = arith.constant 0 : index
    %0 = vector.load %arg1[%c0, %c0_0] : memref<512x16xf32, #tpu.memory_space<vmem>>, vector<512x16xf32>
    %c0_1 = arith.constant 0 : index
    %c0_2 = arith.constant 0 : index
    %1 = vector.load %arg2[%c0_1, %c0_2] : memref<1x16xf32, #tpu.memory_space<vmem>>, vector<1x16xf32>
    %2 = vector.broadcast %1 : vector<1x16xf32> to vector<512x16xf32>
    %3 = arith.mulf %0, %2 : vector<512x16xf32>
    %c0_3 = arith.constant 0 : index
    %c0_4 = arith.constant 0 : index
    %4 = vector.load %arg3[%c0_3, %c0_4] : memref<1x16xf32, #tpu.memory_space<vmem>>, vector<1x16xf32>
    %5 = vector.broadcast %4 : vector<1x16xf32> to vector<512x16xf32>
    %6 = arith.addf %3, %5 : vector<512x16xf32>
    %cst = arith.constant 0.000000e+00 : f32
    %7 = vector.broadcast %cst : f32 to vector<512x16xf32>
    %8 = arith.maximumf %6, %7 : vector<512x16xf32>
    %9 = arith.truncf %8 : vector<512x16xf32> to vector<512x16xbf16>
    %c0_5 = arith.constant 0 : index
    %c0_6 = arith.constant 0 : index
    %10 = vector.load %arg4[%c0_5, %c0_6] : memref<16x8xbf16, #tpu.memory_space<vmem>>, vector<16x8xbf16>
    %cst_7 = arith.constant dense<0.000000e+00> : vector<512x8xf32>
    %11 = tpu.matmul %9, %10, %cst_7 {dimension_numbers = #tpu.dot_dimension_numbers<[1], [0], [0], [1], [0, 0, 1, 1], [], []>} : vector<512x16xbf16>, vector<16x8xbf16>, vector<512x8xf32> -> vector<512x8xf32>
    %c0_8 = arith.constant 0 : index
    %c0_9 = arith.constant 0 : index
    %12 = vector.load %arg5[%c0_8, %c0_9] : memref<1x8xf32, #tpu.memory_space<vmem>>, vector<1x8xf32>
    %13 = vector.broadcast %12 : vector<1x8xf32> to vector<512x8xf32>
    %14 = arith.mulf %11, %13 : vector<512x8xf32>
    %c0_10 = arith.constant 0 : index
    %c0_11 = arith.constant 0 : index
    %15 = vector.load %arg6[%c0_10, %c0_11] : memref<1x8xf32, #tpu.memory_space<vmem>>, vector<1x8xf32>
    %16 = vector.broadcast %15 : vector<1x8xf32> to vector<512x8xf32>
    %17 = arith.addf %14, %16 : vector<512x8xf32>
    %cst_12 = arith.constant 0.000000e+00 : f32
    %18 = vector.broadcast %cst_12 : f32 to vector<512x8xf32>
    %19 = arith.maximumf %17, %18 : vector<512x8xf32>
    %20 = arith.truncf %19 : vector<512x8xf32> to vector<512x8xbf16>
    %c0_13 = arith.constant 0 : index
    %c0_14 = arith.constant 0 : index
    %21 = vector.load %arg7[%c0_13, %c0_14] : memref<512x8xbf16, #tpu.memory_space<vmem>>, vector<512x8xbf16>
    tpu.vector_store %arg7[%c0_13, %c0_14], %20 {strides = array<i32>} : memref<512x8xbf16, #tpu.memory_space<vmem>>, vector<512x8xbf16>,
    return
  }
  func.func @transform_0(%arg0: i32) -> (i32, i32) {
    %c0_i32 = arith.constant 0 : i32
    %c0_i32_0 = arith.constant 0 : i32
    return %arg0, %c0_i32 : i32, i32
  }
  func.func @transform_1(%arg0: i32) -> (i32, i32) {
    %c0_i32 = arith.constant 0 : i32
    %c0_i32_0 = arith.constant 0 : i32
    %c0_i32_1 = arith.constant 0 : i32
    return %c0_i32, %c0_i32_0 : i32, i32
  }
  func.func @transform_2(%arg0: i32) -> (i32, i32) {
    %c0_i32 = arith.constant 0 : i32
    %c0_i32_0 = arith.constant 0 : i32
    %c0_i32_1 = arith.constant 0 : i32
    return %c0_i32, %c0_i32_0 : i32, i32
  }
  func.func @transform_3(%arg0: i32) -> (i32, i32) {
    %c0_i32 = arith.constant 0 : i32
    %c0_i32_0 = arith.constant 0 : i32
    %c0_i32_1 = arith.constant 0 : i32
    return %c0_i32, %c0_i32_0 : i32, i32
  }
  func.func @transform_4(%arg0: i32) -> (i32, i32) {
    %c0_i32 = arith.constant 0 : i32
    %c0_i32_0 = arith.constant 0 : i32
    %c0_i32_1 = arith.constant 0 : i32
    return %c0_i32, %c0_i32_0 : i32, i32
  }
  func.func @transform_5(%arg0: i32) -> (i32, i32) {
    %c0_i32 = arith.constant 0 : i32
    %c0_i32_0 = arith.constant 0 : i32
    %c0_i32_1 = arith.constant 0 : i32
    return %c0_i32, %c0_i32_0 : i32, i32
  }
  func.func @transform_6(%arg0: i32) -> (i32, i32) {
    %c0_i32 = arith.constant 0 : i32
    %c0_i32_0 = arith.constant 0 : i32
    return %arg0, %c0_i32 : i32, i32
  }
}

</mosaic_0001>

<bundles_post_ra>
// kernel: tpu_custom_call.1
= control target key start
LH: loop header
LB: loop body
LE: loop exit
PB: predicated region body
PF: predicated region fallthrough
CT: control target
= control target key end

     0   :  { %vm334_vm0 = vcmask 130048   ;;  %vm1182_vm1 = vcmask 60416   ;;  %s2312_s3 = inlined_call_operand.vmem [shape: bf16[16,8], index: 3, kind: input, shape index: {}]   ;;  %s2313_s0 = inlined_call_operand.vmem [shape: f32[512,16], index: 0, kind: input, shape index: {}]   ;;  %s2314_s1 = inlined_call_operand.vmem [shape: f32[1,16], index: 1, kind: input, shape index: {}]   ;;  %s2315_s2 = inlined_call_operand.vmem [shape: f32[1,16], index: 2, kind: input, shape index: {}]   ;;  %s2316_s4 = inlined_call_operand.vmem [shape: f32[1,8], index: 4, kind: input, shape index: {}]   ;;  %s2317_s5 = inlined_call_operand.vmem [shape: f32[1,8], index: 5, kind: input, shape index: {}]   ;;  %s2318_s6 = inlined_call_operand.vmem [shape: bf16[512,8], index: 6, kind: output, shape index: {}]  }
   0x1   :  { %v1517_v0 = vld [vmem:[%s2312_s3] sm:$0xff]   ;;  %v25_v2 = vld [vmem:[%s2313_s0 + $0x8] sm:$0xff]  ;;  %v26_v11 = vld [vmem:[%s2313_s0 + $0x10] sm:$0xff] }
   0x2   :  { %v24_v1 = vld [vmem:[%s2313_s0] sm:$0xff]  ;;  %1449 = vmatprep.subr.bf16.mxu0 %v1517_v0  ;;  %1515 = vmatprep.subr.bf16.mxu1 %v1517_v0  ;;  %v57_v8 = vld [vmem:[%s2313_s0 + $0x108] sm:$0xff]  ;;  %v27_v12 = vld [vmem:[%s2313_s0 + $0x18] sm:$0xff] }
   0x3   :  { %v1565_v3 = vld [vmem:[%s2314_s1] ss:$0 sm:$0xff]  ;;  %1450 = vmatpush3.bf16.msra.mxu0 %v1517_v0  ;;  %1516 = vmatpush3.bf16.msra.mxu1 %v1517_v0  ;;  %v58_v13 = vld [vmem:[%s2313_s0 + $0x110] sm:$0xff]  ;;  %v59_v18 = vld [vmem:[%s2313_s0 + $0x118] sm:$0xff] }
   0x4   :  { %v95_v4 = vmul.f32 %v1565_v3, %v24_v1  ;;  %v96_v5 = vmul.f32 %v1565_v3, %v25_v2  ;;  %v1572_v6 = vld [vmem:[%s2315_s2] ss:$0 sm:$0xff]  ;;  %v128_v10 = vmul.f32 %v1565_v3, %v57_v8  ;;  %v97_v16 = vmul.f32 %v1565_v3, %v26_v11  ;;  %v29_v28 = vld [vmem:[%s2313_s0 + $0x28] sm:$0xff]  ;;  %v30_v39 = vld [vmem:[%s2313_s0 + $0x30] sm:$0xff] }
   0x5   :  { %v56_v7 = vld [vmem:[%s2313_s0 + $0x100] sm:$0xff]  ;;  %v98_v17 = vmul.f32 %v1565_v3, %v27_v12  ;;  %v129_v21 = vmul.f32 %v1565_v3, %v58_v13  ;;  %v130_v22 = vmul.f32 %v1565_v3, %v59_v18  ;;  %v61_v34 = vld [vmem:[%s2313_s0 + $0x128] sm:$0xff]  ;;  %v31_v40 = vld [vmem:[%s2313_s0 + $0x38] sm:$0xff]  ;;  %v100_v44 = vmul.f32 %v1565_v3, %v29_v28 }
   0x6   :  { %v127_v9 = vmul.f32 %v1565_v3, %v56_v7  ;;  %v166_v14 = vadd.f32 %v1572_v6, %v95_v4  ;;  %v167_v15 = vadd.f32 %v1572_v6, %v96_v5  ;;  %v199_v20 = vadd.f32 %v1572_v6, %v128_v10  ;;  %v28_v23 = vld [vmem:[%s2313_s0 + $0x20] sm:$0xff]  ;;  %v62_v45 = vld [vmem:[%s2313_s0 + $0x130] sm:$0xff]  ;;  %v63_v50 = vld [vmem:[%s2313_s0 + $0x138] sm:$0xff] }
   0x7   :  { %v168_v26 = vadd.f32 %v1572_v6, %v97_v16  ;;  %v169_v27 = vadd.f32 %v1572_v6, %v98_v17  ;;  %v200_v31 = vadd.f32 %v1572_v6, %v129_v21  ;;  %v201_v32 = vadd.f32 %v1572_v6, %v130_v22  ;;  %v60_v33 = vld [vmem:[%s2313_s0 + $0x120] sm:$0xff]  ;;  %v33_v0 = vld [vmem:[%s2313_s0 + $0x48] sm:$0xff]  ;;  %v34_v13 = vld [vmem:[%s2313_s0 + $0x50] sm:$0xff] }
   0x8   :  { %v198_v19 = vadd.f32 %v1572_v6, %v127_v9  ;;  %v230_v24 = vmax.f32 %v166_v14, 0.0  ;;  %v231_v25 = vmax.f32 %v167_v15, 0.0  ;;  %v263_v30 = vmax.f32 %v199_v20, 0.0  ;;  %v32_v55 = vld [vmem:[%s2313_s0 + $0x40] sm:$0xff]  ;;  %v65_v8 = vld [vmem:[%s2313_s0 + $0x148] sm:$0xff]  ;;  %v35_v14 = vld [vmem:[%s2313_s0 + $0x58] sm:$0xff] }
   0x9   :  { %v232_v36 = vmax.f32 %v168_v26, 0.0  ;;  %v233_v37 = vmax.f32 %v169_v27, 0.0  ;;  %v99_v38 = vmul.f32 %v1565_v3, %v28_v23  ;;  %v264_v42 = vmax.f32 %v200_v31, 0.0  ;;  %v64_v7 = vld [vmem:[%s2313_s0 + $0x140] sm:$0xff] }
   0xa   :  { %v262_v29 = vmax.f32 %v198_v19, 0.0  ;;  %v294_v35 = vpack.c.bf16 %v231_v25, %v230_v24  ;;  %v265_v43 = vmax.f32 %v201_v32, 0.0  ;;  %v131_v48 = vmul.f32 %v1565_v3, %v60_v33  ;;  %v66_v19 = vld [vmem:[%s2313_s0 + $0x150] sm:$0xff]  ;;  %v67_v24 = vld [vmem:[%s2313_s0 + $0x158] sm:$0xff] }
   0xb   :  { %v295_v46 = vpack.c.bf16 %v233_v37, %v232_v36  ;;  %v170_v47 = vadd.f32 %v1572_v6, %v99_v38  ;;  %v132_v49 = vmul.f32 %v1565_v3, %v61_v34  ;;  %v171_v52 = vadd.f32 %v1572_v6, %v100_v44  ;;  %v37_v38 = vld [vmem:[%s2313_s0 + $0x68] sm:$0xff] }
   0xc   :  { %v310_v41 = vpack.c.bf16 %v263_v30, %v262_v29  ;;  %1451 = vmatprep.mubr.msk.bf16.mxu0 %vm334_vm0, %v294_v35  ;;  %v311_v51 = vpack.c.bf16 %v265_v43, %v264_v42  ;;  %v101_v53 = vmul.f32 %v1565_v3, %v30_v39  ;;  %v102_v54 = vmul.f32 %v1565_v3, %v31_v40  ;;  %v36_v29 = vld [vmem:[%s2313_s0 + $0x60] sm:$0xff]  ;;  %v69_v44 = vld [vmem:[%s2313_s0 + $0x168] sm:$0xff] }
   0xd   :  { %1452 = vmatmul.mubr.msk.bf16.vlgmr.msra.gmra.mrb[0].mxu0 %vm334_vm0, %v295_v46  ;;  %v234_v56 = vmax.f32 %v170_v47, 0.0  ;;  %v202_v57 = vadd.f32 %v1572_v6, %v131_v48  ;;  %v203_v58 = vadd.f32 %v1572_v6, %v132_v49  ;;  %v133_v59 = vmul.f32 %v1565_v3, %v62_v45  ;;  %v68_v43 = vld [vmem:[%s2313_s0 + $0x160] sm:$0xff]  ;;  %v38_v49 = vld [vmem:[%s2313_s0 + $0x70] sm:$0xff] }
   0xe   :  { %1483 = vmatprep.mubr.msk.bf16.mxu1 %vm334_vm0, %v310_v41  ;;  %v235_v60 = vmax.f32 %v171_v52, 0.0  ;;  %v172_v61 = vadd.f32 %v1572_v6, %v101_v53  ;;  %v173_v62 = vadd.f32 %v1572_v6, %v102_v54  ;;  %v134_v63 = vmul.f32 %v1565_v3, %v63_v50  ;;  %v39_v50 = vld [vmem:[%s2313_s0 + $0x78] sm:$0xff] }
   0xf   :  { %1484 = vmatmul.mubr.msk.bf16.vlgmr.msra.gmra.mrb[0].mxu1 %vm334_vm0, %v311_v51  ;;  %v266_v1 = vmax.f32 %v202_v57, 0.0  ;;  %v267_v2 = vmax.f32 %v203_v58, 0.0  ;;  %v204_v4 = vadd.f32 %v1572_v6, %v133_v59  ;;  %v103_v5 = vmul.f32 %v1565_v3, %v32_v55  ;;  %v70_v55 = vld [vmem:[%s2313_s0 + $0x170] sm:$0xff] }
  0x10   :  { %v296_v9 = vpack.c.bf16 %v235_v60, %v234_v56  ;;  %v236_v10 = vmax.f32 %v172_v61, 0.0  ;;  %v237_v11 = vmax.f32 %v173_v62, 0.0  ;;  %v205_v12 = vadd.f32 %v1572_v6, %v134_v63  ;;  %v71_v60 = vld [vmem:[%s2313_s0 + $0x178] sm:$0xff] }
  0x11   :  { %v312_v15 = vpack.c.bf16 %v267_v2, %v266_v1  ;;  %v268_v16 = vmax.f32 %v204_v4, 0.0  ;;  %v104_v17 = vmul.f32 %v1565_v3, %v33_v0  ;;  %v174_v18 = vadd.f32 %v1572_v6, %v103_v5  ;;  %v40_v1 = vld [vmem:[%s2313_s0 + $0x80] sm:$0xff] }
  0x12   :  { %1455 = vmatprep.mubr.msk.bf16.mxu0 %vm334_vm0, %v296_v9  ;;  %v297_v20 = vpack.c.bf16 %v237_v11, %v236_v10  ;;  %v269_v21 = vmax.f32 %v205_v12, 0.0  ;;  %v135_v22 = vmul.f32 %v1565_v3, %v64_v7  ;;  %v136_v23 = vmul.f32 %v1565_v3, %v65_v8  ;;  %v41_v12 = vld [vmem:[%s2313_s0 + $0x88] sm:$0xff] }
  0x13   :  { %1487 = vmatprep.mubr.msk.bf16.mxu1 %vm334_vm0, %v312_v15  ;;  %v175_v25 = vadd.f32 %v1572_v6, %v104_v17  ;;  %v238_v26 = vmax.f32 %v174_v18, 0.0  ;;  %v105_v27 = vmul.f32 %v1565_v3, %v34_v13  ;;  %v106_v28 = vmul.f32 %v1565_v3, %v35_v14  ;;  %v72_v17 = vld [vmem:[%s2313_s0 + $0x180] sm:$0xff]  ;;  %v73_v18 = vld [vmem:[%s2313_s0 + $0x188] sm:$0xff] }
  0x14   :  { %v313_v30 = vpack.c.bf16 %v269_v21, %v268_v16  ;;  %v206_v31 = vadd.f32 %v1572_v6, %v135_v22  ;;  %v207_v32 = vadd.f32 %v1572_v6, %v136_v23  ;;  %v137_v33 = vmul.f32 %v1565_v3, %v66_v19  ;;  %v42_v23 = vld [vmem:[%s2313_s0 + $0x90] sm:$0xff] }
  0x15   :  { %1456 = vmatmul.mubr.msk.bf16.gmra.mrb[4].mxu0 %vm334_vm0, %v297_v20  ;;  %v239_v34 = vmax.f32 %v175_v25, 0.0  ;;  %v176_v35 = vadd.f32 %v1572_v6, %v105_v27  ;;  %v177_v36 = vadd.f32 %v1572_v6, %v106_v28  ;;  %v138_v37 = vmul.f32 %v1565_v3, %v67_v24  ;;  %v43_v24 = vld [vmem:[%s2313_s0 + $0x98] sm:$0xff] }
  0x16   :  { %v270_v39 = vmax.f32 %v206_v31, 0.0  ;;  %v271_v40 = vmax.f32 %v207_v32, 0.0  ;;  %v208_v41 = vadd.f32 %v1572_v6, %v137_v33  ;;  %v107_v42 = vmul.f32 %v1565_v3, %v36_v29  ;;  %v74_v29 = vld [vmem:[%s2313_s0 + $0x190] sm:$0xff] }
  0x17   :  { %1488 = vmatmul.mubr.msk.bf16.gmra.mrb[4].mxu1 %vm334_vm0, %v313_v30  ;;  %v298_v45 = vpack.c.bf16 %v239_v34, %v238_v26  ;;  %v240_v46 = vmax.f32 %v176_v35, 0.0  ;;  %v241_v47 = vmax.f32 %v177_v36, 0.0  ;;  %v209_v48 = vadd.f32 %v1572_v6, %v138_v37  ;;  %v75_v34 = vld [vmem:[%s2313_s0 + $0x198] sm:$0xff] }
  0x18   :  { %v314_v51 = vpack.c.bf16 %v271_v40, %v270_v39  ;;  %v272_v52 = vmax.f32 %v208_v41, 0.0  ;;  %v108_v53 = vmul.f32 %v1565_v3, %v37_v38  ;;  %v178_v54 = vadd.f32 %v1572_v6, %v107_v42  ;;  %v44_v39 = vld [vmem:[%s2313_s0 + $0xa0] sm:$0xff] }
  0x19   :  { %1459 = vmatprep.mubr.msk.bf16.mxu0 %vm334_vm0, %v298_v45  ;;  %v299_v56 = vpack.c.bf16 %v241_v47, %v240_v46  ;;  %v273_v57 = vmax.f32 %v209_v48, 0.0  ;;  %v139_v58 = vmul.f32 %v1565_v3, %v68_v43  ;;  %v140_v59 = vmul.f32 %v1565_v3, %v69_v44  ;;  %v45_v48 = vld [vmem:[%s2313_s0 + $0xa8] sm:$0xff] }
  0x1a   :  { %1491 = vmatprep.mubr.msk.bf16.mxu1 %vm334_vm0, %v314_v51  ;;  %v179_v61 = vadd.f32 %v1572_v6, %v108_v53  ;;  %v242_v62 = vmax.f32 %v178_v54, 0.0  ;;  %v109_v63 = vmul.f32 %v1565_v3, %v38_v49  ;;  %v110_v0 = vmul.f32 %v1565_v3, %v39_v50  ;;  %v76_v53 = vld [vmem:[%s2313_s0 + $0x1a0] sm:$0xff]  ;;  %v77_v54 = vld [vmem:[%s2313_s0 + $0x1a8] sm:$0xff] }
  0x1b   :  { %v315_v2 = vpack.c.bf16 %v273_v57, %v272_v52  ;;  %v210_v4 = vadd.f32 %v1572_v6, %v139_v58  ;;  %v211_v5 = vadd.f32 %v1572_v6, %v140_v59  ;;  %v141_v7 = vmul.f32 %v1565_v3, %v70_v55  ;;  %v46_v59 = vld [vmem:[%s2313_s0 + $0xb0] sm:$0xff] }
  0x1c   :  { %v243_v8 = vmax.f32 %v179_v61, 0.0  ;;  %v180_v9 = vadd.f32 %v1572_v6, %v109_v63  ;;  %v181_v10 = vadd.f32 %v1572_v6, %v110_v0  ;;  %v142_v11 = vmul.f32 %v1565_v3, %v71_v60  ;;  %v47_v60 = vld [vmem:[%s2313_s0 + $0xb8] sm:$0xff] }
  0x1d   :  { %1460 = vmatmul.mubr.msk.bf16.gmra.mrb[8].mxu0 %vm334_vm0, %v299_v56  ;;  %v274_v13 = vmax.f32 %v210_v4, 0.0  ;;  %v275_v14 = vmax.f32 %v211_v5, 0.0  ;;  %v212_v15 = vadd.f32 %v1572_v6, %v141_v7  ;;  %v111_v16 = vmul.f32 %v1565_v3, %v40_v1  ;;  %v78_v1 = vld [vmem:[%s2313_s0 + $0x1b0] sm:$0xff] }
  0x1e   :  { %v300_v19 = vpack.c.bf16 %v243_v8, %v242_v62  ;;  %v244_v20 = vmax.f32 %v180_v9, 0.0  ;;  %v245_v21 = vmax.f32 %v181_v10, 0.0  ;;  %v213_v22 = vadd.f32 %v1572_v6, %v142_v11  ;;  %v79_v8 = vld [vmem:[%s2313_s0 + $0x1b8] sm:$0xff] }
  0x1f   :  { %1492 = vmatmul.mubr.msk.bf16.gmra.mrb[8].mxu1 %vm334_vm0, %v315_v2  ;;  %v316_v25 = vpack.c.bf16 %v275_v14, %v274_v13  ;;  %v276_v26 = vmax.f32 %v212_v15, 0.0  ;;  %v112_v27 = vmul.f32 %v1565_v3, %v41_v12  ;;  %v182_v28 = vadd.f32 %v1572_v6, %v111_v16  ;;  %v48_v13 = vld [vmem:[%s2313_s0 + $0xc0] sm:$0xff] }
  0x20   :  { %1463 = vmatprep.mubr.msk.bf16.mxu0 %vm334_vm0, %v300_v19  ;;  %v301_v30 = vpack.c.bf16 %v245_v21, %v244_v20  ;;  %v277_v31 = vmax.f32 %v213_v22, 0.0  ;;  %v143_v32 = vmul.f32 %v1565_v3, %v72_v17  ;;  %v144_v33 = vmul.f32 %v1565_v3, %v73_v18  ;;  %v49_v22 = vld [vmem:[%s2313_s0 + $0xc8] sm:$0xff] }
  0x21   :  { %1495 = vmatprep.mubr.msk.bf16.mxu1 %vm334_vm0, %v316_v25  ;;  %v183_v35 = vadd.f32 %v1572_v6, %v112_v27  ;;  %v246_v36 = vmax.f32 %v182_v28, 0.0  ;;  %v113_v37 = vmul.f32 %v1565_v3, %v42_v23  ;;  %v114_v38 = vmul.f32 %v1565_v3, %v43_v24  ;;  %v80_v27 = vld [vmem:[%s2313_s0 + $0x1c0] sm:$0xff]  ;;  %v81_v28 = vld [vmem:[%s2313_s0 + $0x1c8] sm:$0xff] }
  0x22   :  { %v317_v40 = vpack.c.bf16 %v277_v31, %v276_v26  ;;  %v214_v41 = vadd.f32 %v1572_v6, %v143_v32  ;;  %v215_v42 = vadd.f32 %v1572_v6, %v144_v33  ;;  %v145_v43 = vmul.f32 %v1565_v3, %v74_v29  ;;  %v50_v33 = vld [vmem:[%s2313_s0 + $0xd0] sm:$0xff] }
  0x23   :  { %v247_v44 = vmax.f32 %v183_v35, 0.0  ;;  %v184_v45 = vadd.f32 %v1572_v6, %v113_v37  ;;  %v185_v46 = vadd.f32 %v1572_v6, %v114_v38  ;;  %v146_v47 = vmul.f32 %v1565_v3, %v75_v34  ;;  %v51_v34 = vld [vmem:[%s2313_s0 + $0xd8] sm:$0xff] }
  0x24   :  { %v278_v49 = vmax.f32 %v214_v41, 0.0  ;;  %v279_v50 = vmax.f32 %v215_v42, 0.0  ;;  %v216_v51 = vadd.f32 %v1572_v6, %v145_v43  ;;  %v115_v52 = vmul.f32 %v1565_v3, %v44_v39  ;;  %v82_v39 = vld [vmem:[%s2313_s0 + $0x1d0] sm:$0xff] }
  0x25   :  { %1464 = vmatmul.mubr.msk.bf16.gmra.mrb[12].mxu0 %vm334_vm0, %v301_v30  ;;  %v302_v55 = vpack.c.bf16 %v247_v44, %v246_v36  ;;  %v248_v56 = vmax.f32 %v184_v45, 0.0  ;;  %v249_v57 = vmax.f32 %v185_v46, 0.0  ;;  %v217_v58 = vadd.f32 %v1572_v6, %v146_v47  ;;  %v83_v44 = vld [vmem:[%s2313_s0 + $0x1d8] sm:$0xff] }
  0x26   :  { %v318_v61 = vpack.c.bf16 %v279_v50, %v278_v49  ;;  %v280_v62 = vmax.f32 %v216_v51, 0.0  ;;  %v116_v63 = vmul.f32 %v1565_v3, %v45_v48  ;;  %v186_v0 = vadd.f32 %v1572_v6, %v115_v52  ;;  %v52_v49 = vld [vmem:[%s2313_s0 + $0xe0] sm:$0xff] }
  0x27   :  { %1496 = vmatmul.mubr.msk.bf16.gmra.mrb[12].mxu1 %vm334_vm0, %v317_v40  ;;  %1467 = vmatprep.mubr.msk.bf16.mxu0 %vm334_vm0, %v302_v55  ;;  %v303_v2 = vpack.c.bf16 %v249_v57, %v248_v56  ;;  %v281_v4 = vmax.f32 %v217_v58, 0.0  ;;  %v147_v5 = vmul.f32 %v1565_v3, %v76_v53  ;;  %v148_v7 = vmul.f32 %v1565_v3, %v77_v54  ;;  %v53_v58 = vld [vmem:[%s2313_s0 + $0xe8] sm:$0xff] }
  0x28   :  { %1499 = vmatprep.mubr.msk.bf16.mxu1 %vm334_vm0, %v318_v61  ;;  %v187_v9 = vadd.f32 %v1572_v6, %v116_v63  ;;  %v250_v10 = vmax.f32 %v186_v0, 0.0  ;;  %v117_v11 = vmul.f32 %v1565_v3, %v46_v59  ;;  %v118_v12 = vmul.f32 %v1565_v3, %v47_v60  ;;  %v84_v63 = vld [vmem:[%s2313_s0 + $0x1e0] sm:$0xff]  ;;  %v85_v0 = vld [vmem:[%s2313_s0 + $0x1e8] sm:$0xff] }
  0x29   :  { %v319_v14 = vpack.c.bf16 %v281_v4, %v280_v62  ;;  %v218_v15 = vadd.f32 %v1572_v6, %v147_v5  ;;  %v219_v16 = vadd.f32 %v1572_v6, %v148_v7  ;;  %v149_v17 = vmul.f32 %v1565_v3, %v78_v1  ;;  %v54_v5 = vld [vmem:[%s2313_s0 + $0xf0] sm:$0xff]  ;;  %v55_v7 = vld [vmem:[%s2313_s0 + $0xf8] sm:$0xff] }
  0x2a   :  { %v251_v18 = vmax.f32 %v187_v9, 0.0  ;;  %v188_v19 = vadd.f32 %v1572_v6, %v117_v11  ;;  %v189_v20 = vadd.f32 %v1572_v6, %v118_v12  ;;  %v150_v21 = vmul.f32 %v1565_v3, %v79_v8  ;;  %v86_v12 = vld [vmem:[%s2313_s0 + $0x1f0] sm:$0xff] }
  0x2b   :  { %v282_v23 = vmax.f32 %v218_v15, 0.0  ;;  %v283_v24 = vmax.f32 %v219_v16, 0.0  ;;  %v220_v25 = vadd.f32 %v1572_v6, %v149_v17  ;;  %v119_v26 = vmul.f32 %v1565_v3, %v48_v13  ;;  %v87_v17 = vld [vmem:[%s2313_s0 + $0x1f8] sm:$0xff] }
  0x2c   :  { %v304_v29 = vpack.c.bf16 %v251_v18, %v250_v10  ;;  %v252_v30 = vmax.f32 %v188_v19, 0.0  ;;  %v253_v31 = vmax.f32 %v189_v20, 0.0  ;;  %v221_v32 = vadd.f32 %v1572_v6, %v150_v21 }
  0x2d   :  { %1468 = vmatmul.mubr.msk.bf16.gmra.mrb[16].mxu0 %vm334_vm0, %v303_v2  ;;  %v320_v35 = vpack.c.bf16 %v283_v24, %v282_v23  ;;  %v284_v36 = vmax.f32 %v220_v25, 0.0  ;;  %v120_v37 = vmul.f32 %v1565_v3, %v49_v22  ;;  %v190_v38 = vadd.f32 %v1572_v6, %v119_v26 }
  0x2e   :  { %1471 = vmatprep.mubr.msk.bf16.mxu0 %vm334_vm0, %v304_v29  ;;  %v305_v40 = vpack.c.bf16 %v253_v31, %v252_v30  ;;  %v285_v41 = vmax.f32 %v221_v32, 0.0  ;;  %v151_v42 = vmul.f32 %v1565_v3, %v80_v27  ;;  %v152_v43 = vmul.f32 %v1565_v3, %v81_v28 }
  0x2f   :  { %1500 = vmatmul.mubr.msk.bf16.gmra.mrb[16].mxu1 %vm334_vm0, %v319_v14  ;;  %v191_v45 = vadd.f32 %v1572_v6, %v120_v37  ;;  %v254_v46 = vmax.f32 %v190_v38, 0.0  ;;  %v121_v47 = vmul.f32 %v1565_v3, %v50_v33  ;;  %v122_v48 = vmul.f32 %v1565_v3, %v51_v34 }
  0x30   :  { %1503 = vmatprep.mubr.msk.bf16.mxu1 %vm334_vm0, %v320_v35  ;;  %v321_v50 = vpack.c.bf16 %v285_v41, %v284_v36  ;;  %v222_v51 = vadd.f32 %v1572_v6, %v151_v42  ;;  %v223_v52 = vadd.f32 %v1572_v6, %v152_v43  ;;  %v153_v53 = vmul.f32 %v1565_v3, %v82_v39  ;;  %v1926_v43 = vld [vmem:[%s2317_s5] ss:$0 sm:$0xff] }
  0x31   :  { %v255_v54 = vmax.f32 %v191_v45, 0.0  ;;  %v192_v55 = vadd.f32 %v1572_v6, %v121_v47  ;;  %v193_v56 = vadd.f32 %v1572_v6, %v122_v48  ;;  %v154_v57 = vmul.f32 %v1565_v3, %v83_v44 }
  0x32   :  { %v286_v59 = vmax.f32 %v222_v51, 0.0  ;;  %v287_v60 = vmax.f32 %v223_v52, 0.0  ;;  %v224_v61 = vadd.f32 %v1572_v6, %v153_v53  ;;  %v123_v62 = vmul.f32 %v1565_v3, %v52_v49 }
  0x33   :  { %v306_v1 = vpack.c.bf16 %v255_v54, %v254_v46  ;;  %v256_v2 = vmax.f32 %v192_v55, 0.0  ;;  %v225_v4 = vadd.f32 %v1572_v6, %v154_v57  ;;  %v257_v9 = vmax.f32 %v193_v56, 0.0 }
  0x34   :  { %v322_v8 = vpack.c.bf16 %v287_v60, %v286_v59  ;;  %v124_v10 = vmul.f32 %v1565_v3, %v53_v58  ;;  %v194_v11 = vadd.f32 %v1572_v6, %v123_v62  ;;  %v288_v13 = vmax.f32 %v224_v61, 0.0 }
  0x35   :  { %1472 = vmatmul.mubr.msk.bf16.gmra.mrb[20].mxu0 %vm334_vm0, %v305_v40  ;;  %v289_v14 = vmax.f32 %v225_v4, 0.0  ;;  %v155_v15 = vmul.f32 %v1565_v3, %v84_v63  ;;  %v156_v16 = vmul.f32 %v1565_v3, %v85_v0  ;;  %v125_v20 = vmul.f32 %v1565_v3, %v54_v5 }
  0x36   :  { %1475 = vmatprep.mubr.msk.bf16.mxu0 %vm334_vm0, %v306_v1  ;;  %v195_v18 = vadd.f32 %v1572_v6, %v124_v10  ;;  %v258_v19 = vmax.f32 %v194_v11, 0.0  ;;  %v126_v21 = vmul.f32 %v1565_v3, %v55_v7  ;;  %v157_v24 = vmul.f32 %v1565_v3, %v86_v12 }
  0x37   :  { %1504 = vmatmul.mubr.msk.bf16.gmra.mrb[20].mxu1 %vm334_vm0, %v321_v50  ;;  %v226_v22 = vadd.f32 %v1572_v6, %v155_v15  ;;  %v227_v23 = vadd.f32 %v1572_v6, %v156_v16  ;;  %v307_v25 = vpack.c.bf16 %v257_v9, %v256_v2  ;;  %v158_v27 = vmul.f32 %v1565_v3, %v87_v17 }
  0x38   :  { %1507 = vmatprep.mubr.msk.bf16.mxu1 %vm334_vm0, %v322_v8  ;;  %v259_v26 = vmax.f32 %v195_v18, 0.0  ;;  %v196_v30 = vadd.f32 %v1572_v6, %v125_v20  ;;  %v197_v31 = vadd.f32 %v1572_v6, %v126_v21  ;;  %v323_v32 = vpack.c.bf16 %v289_v14, %v288_v13 }
  0x39   :  { %v290_v28 = vmax.f32 %v226_v22, 0.0  ;;  %v291_v29 = vmax.f32 %v227_v23, 0.0  ;;  %v228_v34 = vadd.f32 %v1572_v6, %v157_v24  ;;  %v229_v35 = vadd.f32 %v1572_v6, %v158_v27  ;;  %v1921_v6 = vld [vmem:[%s2316_s4] ss:$0 sm:$0xff] }
  0x3a   :  { %v308_v33 = vpack.c.bf16 %v259_v26, %v258_v19  ;;  %v260_v37 = vmax.f32 %v196_v30, 0.0  ;;  %v261_v38 = vmax.f32 %v197_v31, 0.0 }
  0x3b   :  { %v324_v36 = vpack.c.bf16 %v291_v29, %v290_v28  ;;  %v292_v3 = vmax.f32 %v228_v34, 0.0  ;;  %v293_v39 = vmax.f32 %v229_v35, 0.0 }
  0x3c   :  { %v309_v40 = vpack.c.bf16 %v261_v38, %v260_v37 }
  0x3d   :  { %1476 = vmatmul.mubr.msk.bf16.gmra.mrb[24].mxu0 %vm334_vm0, %v307_v25  ;;  %v325_v41 = vpack.c.bf16 %v293_v39, %v292_v3 }
  0x3e   :  { %1479 = vmatprep.mubr.msk.bf16.mxu0 %vm334_vm0, %v308_v33 }
  0x3f   :  { %1508 = vmatmul.mubr.msk.bf16.gmra.mrb[24].mxu1 %vm334_vm0, %v323_v32 }
  0x40   :  { %1511 = vmatprep.mubr.msk.bf16.mxu1 %vm334_vm0, %v324_v36 }
  0x45   :  { %1480 = vmatmul.mubr.msk.bf16.gmra.mrb[28].mxu0 %vm334_vm0, %v309_v40 }
  0x47   :  { %1512 = vmatmul.mubr.msk.bf16.gmra.mrb[28].mxu1 %vm334_vm0, %v325_v41 }
  0xe0   :  { %v1453_v42 = vpop.f32.mrb[0].mxu0 }
  0xe1   :  { %v729_v44 = vmul.f32 %v1453_v42, %v1921_v6  ;;  %v465_v46 = vpop.f32.mrb[1].mxu0 }
  0xe2   :  { %v1485_v45 = vpop.f32.mrb[0].mxu1  ;;  %v727_v48 = vmul.f32 %v1921_v6, %v465_v46  ;;  %v1454_v50 = vpop.f32.mrb[2].mxu0 }
  0xe3   :  { %v761_v47 = vmul.f32 %v1485_v45, %v1921_v6  ;;  %v593_v49 = vpop.f32.mrb[1].mxu1  ;;  %v800_v51 = vadd.f32 %v1926_v43, %v729_v44  ;;  %v730_v53 = vmul.f32 %v1454_v50, %v1921_v6  ;;  %v468_v55 = vpop.f32.mrb[3].mxu0 }
  0xe4   :  { %v759_v52 = vmul.f32 %v1921_v6, %v593_v49  ;;  %v1486_v54 = vpop.f32.mrb[2].mxu1  ;;  %v798_v57 = vadd.f32 %v1926_v43, %v727_v48  ;;  %v728_v59 = vmul.f32 %v1921_v6, %v468_v55 }
  0xe5   :  { %v832_v56 = vadd.f32 %v1926_v43, %v761_v47  ;;  %v762_v58 = vmul.f32 %v1486_v54, %v1921_v6  ;;  %v596_v60 = vpop.f32.mrb[3].mxu1  ;;  %v864_v61 = vmax.f32 %v800_v51, 0.0  ;;  %v801_v63 = vadd.f32 %v1926_v43, %v730_v53 }
  0xe6   :  { %v830_v62 = vadd.f32 %v1926_v43, %v759_v52  ;;  %v760_v0 = vmul.f32 %v1921_v6, %v596_v60  ;;  %v862_v2 = vmax.f32 %v798_v57, 0.0  ;;  %v799_v5 = vadd.f32 %v1926_v43, %v728_v59 }
  0xe7   :  { %v896_v1 = vmax.f32 %v832_v56, 0.0  ;;  %v833_v4 = vadd.f32 %v1926_v43, %v762_v58  ;;  %v1354_v7 = vpack.c.bf16 %v864_v61, %v864_v61  ;;  %v865_v9 = vmax.f32 %v801_v63, 0.0 }
  0xe8   :  { %v894_v8 = vmax.f32 %v830_v62, 0.0  ;;  %v831_v10 = vadd.f32 %v1926_v43, %v760_v0  ;;  %v1352_v12 = vpack.c.bf16 %v862_v2, %v862_v2  ;;  %v863_v14 = vmax.f32 %v799_v5, 0.0  ;;  %v1457_v15 = vpop.f32.mrb[4].mxu0 }
  0xe9   :  { %v1386_v11 = vpack.c.bf16 %v896_v1, %v896_v1  ;;  %v897_v13 = vmax.f32 %v833_v4, 0.0  ;;  %1185 = vst.msk [vmem:[%s2318_s6 + $0x8] sm:$0xf] %vm1182_vm1, %v1354_v7  ;;  %v1355_v17 = vpack.c.bf16 %v865_v9, %v865_v9  ;;  %v733_v19 = vmul.f32 %v1457_v15, %v1921_v6  ;;  %v481_v21 = vpop.f32.mrb[5].mxu0 }
  0xea   :  { %v1384_v16 = vpack.c.bf16 %v894_v8, %v894_v8  ;;  %v895_v18 = vmax.f32 %v831_v10, 0.0  ;;  %v1489_v20 = vpop.f32.mrb[4].mxu1  ;;  %1183 = vst.msk [vmem:[%s2318_s6] sm:$0xf] %vm1182_vm1, %v1352_v12  ;;  %v1353_v23 = vpack.c.bf16 %v863_v14, %v863_v14  ;;  %v731_v25 = vmul.f32 %v1921_v6, %v481_v21  ;;  %v1458_v27 = vpop.f32.mrb[6].mxu0 }
  0xeb   :  { %1217 = vst.msk [vmem:[%s2318_s6 + $0x88] sm:$0xf] %vm1182_vm1, %v1386_v11  ;;  %v1387_v22 = vpack.c.bf16 %v897_v13, %v897_v13  ;;  %v765_v24 = vmul.f32 %v1489_v20, %v1921_v6  ;;  %v609_v26 = vpop.f32.mrb[5].mxu1  ;;  %1186 = vst.msk [vmem:[%s2318_s6 + $0xc] sm:$0xf] %vm1182_vm1, %v1355_v17  ;;  %v804_v29 = vadd.f32 %v1926_v43, %v733_v19  ;;  %v484_v33 = vpop.f32.mrb[7].mxu0 }
  0xec   :  { %1215 = vst.msk [vmem:[%s2318_s6 + $0x80] sm:$0xf] %vm1182_vm1, %v1384_v16  ;;  %v1385_v28 = vpack.c.bf16 %v895_v18, %v895_v18  ;;  %v763_v30 = vmul.f32 %v1921_v6, %v609_v26  ;;  %v734_v31 = vmul.f32 %v1458_v27, %v1921_v6  ;;  %v1490_v32 = vpop.f32.mrb[6].mxu1  ;;  %1184 = vst.msk [vmem:[%s2318_s6 + $0x4] sm:$0xf] %vm1182_vm1, %v1353_v23 }
  0xed   :  { %1218 = vst.msk [vmem:[%s2318_s6 + $0x8c] sm:$0xf] %vm1182_vm1, %v1387_v22  ;;  %v836_v34 = vadd.f32 %v1926_v43, %v765_v24  ;;  %v802_v35 = vadd.f32 %v1926_v43, %v731_v25  ;;  %v766_v36 = vmul.f32 %v1490_v32, %v1921_v6  ;;  %v732_v37 = vmul.f32 %v1921_v6, %v484_v33  ;;  %v612_v38 = vpop.f32.mrb[7].mxu1 }
  0xee   :  { %1216 = vst.msk [vmem:[%s2318_s6 + $0x84] sm:$0xf] %vm1182_vm1, %v1385_v28  ;;  %v868_v3 = vmax.f32 %v804_v29, 0.0  ;;  %v834_v39 = vadd.f32 %v1926_v43, %v763_v30  ;;  %v805_v40 = vadd.f32 %v1926_v43, %v734_v31  ;;  %v764_v41 = vmul.f32 %v1921_v6, %v612_v38 }
  0xef   :  { %v900_v42 = vmax.f32 %v836_v34, 0.0  ;;  %v866_v44 = vmax.f32 %v802_v35, 0.0  ;;  %v837_v45 = vadd.f32 %v1926_v43, %v766_v36  ;;  %v803_v46 = vadd.f32 %v1926_v43, %v732_v37 }
  0xf0   :  { %v1358_v47 = vpack.c.bf16 %v868_v3, %v868_v3  ;;  %v898_v48 = vmax.f32 %v834_v39, 0.0  ;;  %v869_v49 = vmax.f32 %v805_v40, 0.0  ;;  %v835_v50 = vadd.f32 %v1926_v43, %v764_v41  ;;  %v1461_v55 = vpop.f32.mrb[8].mxu0 }
  0xf1   :  { %v1390_v51 = vpack.c.bf16 %v900_v42, %v900_v42  ;;  %v1356_v52 = vpack.c.bf16 %v866_v44, %v866_v44  ;;  %v901_v53 = vmax.f32 %v837_v45, 0.0  ;;  %v867_v54 = vmax.f32 %v803_v46, 0.0  ;;  %v497_v61 = vpop.f32.mrb[9].mxu0 }
  0xf2   :  { %1189 = vst.msk [vmem:[%s2318_s6 + $0x18] sm:$0xf] %vm1182_vm1, %v1358_v47  ;;  %v1388_v56 = vpack.c.bf16 %v898_v48, %v898_v48  ;;  %v1359_v57 = vpack.c.bf16 %v869_v49, %v869_v49  ;;  %v899_v58 = vmax.f32 %v835_v50, 0.0  ;;  %v737_v59 = vmul.f32 %v1461_v55, %v1921_v6  ;;  %v1493_v60 = vpop.f32.mrb[8].mxu1  ;;  %v1462_v4 = vpop.f32.mrb[10].mxu0 }
  0xf3   :  { %1221 = vst.msk [vmem:[%s2318_s6 + $0x98] sm:$0xf] %vm1182_vm1, %v1390_v51  ;;  %1187 = vst.msk [vmem:[%s2318_s6 + $0x10] sm:$0xf] %vm1182_vm1, %v1356_v52  ;;  %v1391_v62 = vpack.c.bf16 %v901_v53, %v901_v53  ;;  %v1357_v63 = vpack.c.bf16 %v867_v54, %v867_v54  ;;  %v769_v0 = vmul.f32 %v1493_v60, %v1921_v6  ;;  %v625_v2 = vpop.f32.mrb[9].mxu1  ;;  %v500_v11 = vpop.f32.mrb[11].mxu0 }
  0xf4   :  { %v735_v1 = vmul.f32 %v1921_v6, %v497_v61  ;;  %1219 = vst.msk [vmem:[%s2318_s6 + $0x90] sm:$0xf] %vm1182_vm1, %v1388_v56  ;;  %1190 = vst.msk [vmem:[%s2318_s6 + $0x1c] sm:$0xf] %vm1182_vm1, %v1359_v57  ;;  %v1389_v5 = vpack.c.bf16 %v899_v58, %v899_v58  ;;  %v808_v7 = vadd.f32 %v1926_v43, %v737_v59  ;;  %v1494_v10 = vpop.f32.mrb[10].mxu1 }
  0xf5   :  { %v767_v8 = vmul.f32 %v1921_v6, %v625_v2  ;;  %v738_v9 = vmul.f32 %v1462_v4, %v1921_v6  ;;  %1222 = vst.msk [vmem:[%s2318_s6 + $0x9c] sm:$0xf] %vm1182_vm1, %v1391_v62  ;;  %1188 = vst.msk [vmem:[%s2318_s6 + $0x14] sm:$0xf] %vm1182_vm1, %v1357_v63  ;;  %v840_v12 = vadd.f32 %v1926_v43, %v769_v0  ;;  %v628_v16 = vpop.f32.mrb[11].mxu1 }
  0xf6   :  { %v806_v13 = vadd.f32 %v1926_v43, %v735_v1  ;;  %v770_v14 = vmul.f32 %v1494_v10, %v1921_v6  ;;  %v736_v15 = vmul.f32 %v1921_v6, %v500_v11  ;;  %1220 = vst.msk [vmem:[%s2318_s6 + $0x94] sm:$0xf] %vm1182_vm1, %v1389_v5  ;;  %v872_v17 = vmax.f32 %v808_v7, 0.0 }
  0xf7   :  { %v838_v18 = vadd.f32 %v1926_v43, %v767_v8  ;;  %v809_v19 = vadd.f32 %v1926_v43, %v738_v9  ;;  %v768_v20 = vmul.f32 %v1921_v6, %v628_v16  ;;  %v904_v21 = vmax.f32 %v840_v12, 0.0 }
  0xf8   :  { %v870_v22 = vmax.f32 %v806_v13, 0.0  ;;  %v841_v23 = vadd.f32 %v1926_v43, %v770_v14  ;;  %v807_v24 = vadd.f32 %v1926_v43, %v736_v15  ;;  %v1362_v25 = vpack.c.bf16 %v872_v17, %v872_v17  ;;  %v1465_v33 = vpop.f32.mrb[12].mxu0 }
  0xf9   :  { %v902_v26 = vmax.f32 %v838_v18, 0.0  ;;  %v873_v27 = vmax.f32 %v809_v19, 0.0  ;;  %v839_v28 = vadd.f32 %v1926_v43, %v768_v20  ;;  %v1394_v29 = vpack.c.bf16 %v904_v21, %v904_v21  ;;  %v513_v3 = vpop.f32.mrb[13].mxu0 }
  0xfa   :  { %v1360_v30 = vpack.c.bf16 %v870_v22, %v870_v22  ;;  %v905_v31 = vmax.f32 %v841_v23, 0.0  ;;  %v871_v32 = vmax.f32 %v807_v24, 0.0  ;;  %1193 = vst.msk [vmem:[%s2318_s6 + $0x28] sm:$0xf] %vm1182_vm1, %v1362_v25  ;;  %v741_v37 = vmul.f32 %v1465_v33, %v1921_v6  ;;  %v1497_v38 = vpop.f32.mrb[12].mxu1  ;;  %v1466_v45 = vpop.f32.mrb[14].mxu0 }
  0xfb   :  { %v1392_v34 = vpack.c.bf16 %v902_v26, %v902_v26  ;;  %v1363_v35 = vpack.c.bf16 %v873_v27, %v873_v27  ;;  %v903_v36 = vmax.f32 %v839_v28, 0.0  ;;  %1225 = vst.msk [vmem:[%s2318_s6 + $0xa8] sm:$0xf] %vm1182_vm1, %v1394_v29  ;;  %v773_v41 = vmul.f32 %v1497_v38, %v1921_v6  ;;  %v641_v44 = vpop.f32.mrb[13].mxu1  ;;  %v516_v51 = vpop.f32.mrb[15].mxu0 }
  0xfc   :  { %1191 = vst.msk [vmem:[%s2318_s6 + $0x20] sm:$0xf] %vm1182_vm1, %v1360_v30  ;;  %v1395_v39 = vpack.c.bf16 %v905_v31, %v905_v31  ;;  %v1361_v40 = vpack.c.bf16 %v871_v32, %v871_v32  ;;  %v739_v42 = vmul.f32 %v1921_v6, %v513_v3  ;;  %v812_v47 = vadd.f32 %v1926_v43, %v741_v37  ;;  %v1498_v50 = vpop.f32.mrb[14].mxu1 }
  0xfd   :  { %1223 = vst.msk [vmem:[%s2318_s6 + $0xa0] sm:$0xf] %vm1182_vm1, %v1392_v34  ;;  %1194 = vst.msk [vmem:[%s2318_s6 + $0x2c] sm:$0xf] %vm1182_vm1, %v1363_v35  ;;  %v1393_v46 = vpack.c.bf16 %v903_v36, %v903_v36  ;;  %v771_v48 = vmul.f32 %v1921_v6, %v641_v44  ;;  %v742_v49 = vmul.f32 %v1466_v45, %v1921_v6  ;;  %v644_v56 = vpop.f32.mrb[15].mxu1 }
  0xfe   :  { %1226 = vst.msk [vmem:[%s2318_s6 + $0xac] sm:$0xf] %vm1182_vm1, %v1395_v39  ;;  %1192 = vst.msk [vmem:[%s2318_s6 + $0x24] sm:$0xf] %vm1182_vm1, %v1361_v40  ;;  %v844_v52 = vadd.f32 %v1926_v43, %v773_v41  ;;  %v810_v53 = vadd.f32 %v1926_v43, %v739_v42  ;;  %v774_v54 = vmul.f32 %v1498_v50, %v1921_v6  ;;  %v876_v57 = vmax.f32 %v812_v47, 0.0 }
  0xff   :  { %v740_v55 = vmul.f32 %v1921_v6, %v516_v51  ;;  %1224 = vst.msk [vmem:[%s2318_s6 + $0xa4] sm:$0xf] %vm1182_vm1, %v1393_v46  ;;  %v842_v58 = vadd.f32 %v1926_v43, %v771_v48  ;;  %v813_v59 = vadd.f32 %v1926_v43, %v742_v49  ;;  %v772_v60 = vmul.f32 %v1921_v6, %v644_v56 }
 0x100   :  { %v908_v61 = vmax.f32 %v844_v52, 0.0  ;;  %v874_v62 = vmax.f32 %v810_v53, 0.0  ;;  %v845_v63 = vadd.f32 %v1926_v43, %v774_v54  ;;  %v1366_v1 = vpack.c.bf16 %v876_v57, %v876_v57  ;;  %v1469_v11 = vpop.f32.mrb[16].mxu0 }
 0x101   :  { %v811_v0 = vadd.f32 %v1926_v43, %v740_v55  ;;  %v906_v2 = vmax.f32 %v842_v58, 0.0  ;;  %v877_v4 = vmax.f32 %v813_v59, 0.0  ;;  %v843_v5 = vadd.f32 %v1926_v43, %v772_v60  ;;  %v529_v17 = vpop.f32.mrb[17].mxu0 }
 0x102   :  { %v1398_v7 = vpack.c.bf16 %v908_v61, %v908_v61  ;;  %v1364_v8 = vpack.c.bf16 %v874_v62, %v874_v62  ;;  %v909_v9 = vmax.f32 %v845_v63, 0.0  ;;  %1197 = vst.msk [vmem:[%s2318_s6 + $0x38] sm:$0xf] %vm1182_vm1, %v1366_v1  ;;  %v745_v15 = vmul.f32 %v1469_v11, %v1921_v6  ;;  %v1501_v16 = vpop.f32.mrb[16].mxu1  ;;  %v1470_v23 = vpop.f32.mrb[18].mxu0 }
 0x103   :  { %v875_v10 = vmax.f32 %v811_v0, 0.0  ;;  %v1396_v12 = vpack.c.bf16 %v906_v2, %v906_v2  ;;  %v1367_v13 = vpack.c.bf16 %v877_v4, %v877_v4  ;;  %v907_v14 = vmax.f32 %v843_v5, 0.0  ;;  %v657_v22 = vpop.f32.mrb[17].mxu1  ;;  %v532_v29 = vpop.f32.mrb[19].mxu0 }
 0x104   :  { %1229 = vst.msk [vmem:[%s2318_s6 + $0xb8] sm:$0xf] %vm1182_vm1, %v1398_v7  ;;  %1195 = vst.msk [vmem:[%s2318_s6 + $0x30] sm:$0xf] %vm1182_vm1, %v1364_v8  ;;  %v1399_v18 = vpack.c.bf16 %v909_v9, %v909_v9  ;;  %v777_v20 = vmul.f32 %v1501_v16, %v1921_v6  ;;  %v743_v21 = vmul.f32 %v1921_v6, %v529_v17  ;;  %v1502_v28 = vpop.f32.mrb[18].mxu1 }
 0x105   :  { %v1365_v19 = vpack.c.bf16 %v875_v10, %v875_v10  ;;  %1227 = vst.msk [vmem:[%s2318_s6 + $0xb0] sm:$0xf] %vm1182_vm1, %v1396_v12  ;;  %1198 = vst.msk [vmem:[%s2318_s6 + $0x3c] sm:$0xf] %vm1182_vm1, %v1367_v13  ;;  %v1397_v24 = vpack.c.bf16 %v907_v14, %v907_v14  ;;  %v816_v25 = vadd.f32 %v1926_v43, %v745_v15  ;;  %v660_v34 = vpop.f32.mrb[19].mxu1 }
 0x106   :  { %v775_v26 = vmul.f32 %v1921_v6, %v657_v22  ;;  %v746_v27 = vmul.f32 %v1470_v23, %v1921_v6  ;;  %1230 = vst.msk [vmem:[%s2318_s6 + $0xbc] sm:$0xf] %vm1182_vm1, %v1399_v18  ;;  %v848_v30 = vadd.f32 %v1926_v43, %v777_v20  ;;  %v814_v31 = vadd.f32 %v1926_v43, %v743_v21 }
 0x107   :  { %1196 = vst.msk [vmem:[%s2318_s6 + $0x34] sm:$0xf] %vm1182_vm1, %v1365_v19  ;;  %v778_v32 = vmul.f32 %v1502_v28, %v1921_v6  ;;  %v744_v33 = vmul.f32 %v1921_v6, %v532_v29  ;;  %1228 = vst.msk [vmem:[%s2318_s6 + $0xb4] sm:$0xf] %vm1182_vm1, %v1397_v24  ;;  %v880_v35 = vmax.f32 %v816_v25, 0.0  ;;  %v776_v38 = vmul.f32 %v1921_v6, %v660_v34 }
 0x108   :  { %v846_v36 = vadd.f32 %v1926_v43, %v775_v26  ;;  %v817_v37 = vadd.f32 %v1926_v43, %v746_v27  ;;  %v912_v3 = vmax.f32 %v848_v30, 0.0  ;;  %v878_v39 = vmax.f32 %v814_v31, 0.0  ;;  %v1473_v51 = vpop.f32.mrb[20].mxu0 }
 0x109   :  { %v849_v40 = vadd.f32 %v1926_v43, %v778_v32  ;;  %v815_v41 = vadd.f32 %v1926_v43, %v744_v33  ;;  %v1370_v42 = vpack.c.bf16 %v880_v35, %v880_v35  ;;  %v847_v46 = vadd.f32 %v1926_v43, %v776_v38  ;;  %v545_v57 = vpop.f32.mrb[21].mxu0 }
 0x10a   :  { %v910_v44 = vmax.f32 %v846_v36, 0.0  ;;  %v881_v45 = vmax.f32 %v817_v37, 0.0  ;;  %v1402_v47 = vpack.c.bf16 %v912_v3, %v912_v3  ;;  %v1368_v48 = vpack.c.bf16 %v878_v39, %v878_v39  ;;  %v1505_v56 = vpop.f32.mrb[20].mxu1  ;;  %v1474_v63 = vpop.f32.mrb[22].mxu0 }
 0x10b   :  { %v913_v49 = vmax.f32 %v849_v40, 0.0  ;;  %v879_v50 = vmax.f32 %v815_v41, 0.0  ;;  %1201 = vst.msk [vmem:[%s2318_s6 + $0x48] sm:$0xf] %vm1182_vm1, %v1370_v42  ;;  %v911_v54 = vmax.f32 %v847_v46, 0.0  ;;  %v749_v55 = vmul.f32 %v1473_v51, %v1921_v6  ;;  %v673_v62 = vpop.f32.mrb[21].mxu1 }
 0x10c   :  { %v1400_v52 = vpack.c.bf16 %v910_v44, %v910_v44  ;;  %v1371_v53 = vpack.c.bf16 %v881_v45, %v881_v45  ;;  %1233 = vst.msk [vmem:[%s2318_s6 + $0xc8] sm:$0xf] %vm1182_vm1, %v1402_v47  ;;  %1199 = vst.msk [vmem:[%s2318_s6 + $0x40] sm:$0xf] %vm1182_vm1, %v1368_v48  ;;  %v781_v60 = vmul.f32 %v1505_v56, %v1921_v6  ;;  %v1506_v5 = vpop.f32.mrb[22].mxu1  ;;  %v548_v7 = vpop.f32.mrb[23].mxu0 }
 0x10d   :  { %v1403_v58 = vpack.c.bf16 %v913_v49, %v913_v49  ;;  %v1369_v59 = vpack.c.bf16 %v879_v50, %v879_v50  ;;  %v747_v61 = vmul.f32 %v1921_v6, %v545_v57  ;;  %v1401_v0 = vpack.c.bf16 %v911_v54, %v911_v54  ;;  %v676_v12 = vpop.f32.mrb[23].mxu1 }
 0x10e   :  { %1231 = vst.msk [vmem:[%s2318_s6 + $0xc0] sm:$0xf] %vm1182_vm1, %v1400_v52  ;;  %1202 = vst.msk [vmem:[%s2318_s6 + $0x4c] sm:$0xf] %vm1182_vm1, %v1371_v53  ;;  %v820_v1 = vadd.f32 %v1926_v43, %v749_v55  ;;  %v779_v2 = vmul.f32 %v1921_v6, %v673_v62  ;;  %v750_v4 = vmul.f32 %v1474_v63, %v1921_v6 }
 0x10f   :  { %1234 = vst.msk [vmem:[%s2318_s6 + $0xcc] sm:$0xf] %vm1182_vm1, %v1403_v58  ;;  %1200 = vst.msk [vmem:[%s2318_s6 + $0x44] sm:$0xf] %vm1182_vm1, %v1369_v59  ;;  %v852_v8 = vadd.f32 %v1926_v43, %v781_v60  ;;  %v818_v9 = vadd.f32 %v1926_v43, %v747_v61  ;;  %v782_v10 = vmul.f32 %v1506_v5, %v1921_v6 }
 0x110   :  { %v748_v11 = vmul.f32 %v1921_v6, %v548_v7  ;;  %1232 = vst.msk [vmem:[%s2318_s6 + $0xc4] sm:$0xf] %vm1182_vm1, %v1401_v0  ;;  %v884_v13 = vmax.f32 %v820_v1, 0.0  ;;  %v850_v14 = vadd.f32 %v1926_v43, %v779_v2  ;;  %v821_v15 = vadd.f32 %v1926_v43, %v750_v4  ;;  %v1477_v29 = vpop.f32.mrb[24].mxu0 }
 0x111   :  { %v780_v16 = vmul.f32 %v1921_v6, %v676_v12  ;;  %v916_v17 = vmax.f32 %v852_v8, 0.0  ;;  %v882_v18 = vmax.f32 %v818_v9, 0.0  ;;  %v853_v19 = vadd.f32 %v1926_v43, %v782_v10  ;;  %v561_v35 = vpop.f32.mrb[25].mxu0 }
 0x112   :  { %v819_v20 = vadd.f32 %v1926_v43, %v748_v11  ;;  %v1374_v21 = vpack.c.bf16 %v884_v13, %v884_v13  ;;  %v914_v22 = vmax.f32 %v850_v14, 0.0  ;;  %v885_v23 = vmax.f32 %v821_v15, 0.0  ;;  %v1509_v34 = vpop.f32.mrb[24].mxu1  ;;  %v1478_v40 = vpop.f32.mrb[26].mxu0 }
 0x113   :  { %v851_v24 = vadd.f32 %v1926_v43, %v780_v16  ;;  %v1406_v25 = vpack.c.bf16 %v916_v17, %v916_v17  ;;  %v1372_v26 = vpack.c.bf16 %v882_v18, %v882_v18  ;;  %v917_v27 = vmax.f32 %v853_v19, 0.0  ;;  %v689_v39 = vpop.f32.mrb[25].mxu1  ;;  %v564_v47 = vpop.f32.mrb[27].mxu0 }
 0x114   :  { %v883_v28 = vmax.f32 %v819_v20, 0.0  ;;  %1205 = vst.msk [vmem:[%s2318_s6 + $0x58] sm:$0xf] %vm1182_vm1, %v1374_v21  ;;  %v1404_v30 = vpack.c.bf16 %v914_v22, %v914_v22  ;;  %v1375_v31 = vpack.c.bf16 %v885_v23, %v885_v23  ;;  %v753_v33 = vmul.f32 %v1477_v29, %v1921_v6  ;;  %v1510_v46 = vpop.f32.mrb[26].mxu1 }
 0x115   :  { %v915_v32 = vmax.f32 %v851_v24, 0.0  ;;  %1237 = vst.msk [vmem:[%s2318_s6 + $0xd8] sm:$0xf] %vm1182_vm1, %v1406_v25  ;;  %1203 = vst.msk [vmem:[%s2318_s6 + $0x50] sm:$0xf] %vm1182_vm1, %v1372_v26  ;;  %v1407_v36 = vpack.c.bf16 %v917_v27, %v917_v27  ;;  %v785_v38 = vmul.f32 %v1509_v34, %v1921_v6  ;;  %v751_v3 = vmul.f32 %v1921_v6, %v561_v35  ;;  %v692_v52 = vpop.f32.mrb[27].mxu1 }
 0x116   :  { %v1373_v37 = vpack.c.bf16 %v883_v28, %v883_v28  ;;  %1235 = vst.msk [vmem:[%s2318_s6 + $0xd0] sm:$0xf] %vm1182_vm1, %v1404_v30  ;;  %1206 = vst.msk [vmem:[%s2318_s6 + $0x5c] sm:$0xf] %vm1182_vm1, %v1375_v31  ;;  %v824_v42 = vadd.f32 %v1926_v43, %v753_v33  ;;  %v783_v44 = vmul.f32 %v1921_v6, %v689_v39 }
 0x117   :  { %v1405_v41 = vpack.c.bf16 %v915_v32, %v915_v32  ;;  %v754_v45 = vmul.f32 %v1478_v40, %v1921_v6  ;;  %1238 = vst.msk [vmem:[%s2318_s6 + $0xdc] sm:$0xf] %vm1182_vm1, %v1407_v36  ;;  %v856_v48 = vadd.f32 %v1926_v43, %v785_v38  ;;  %v822_v49 = vadd.f32 %v1926_v43, %v751_v3 }
 0x118   :  { %1204 = vst.msk [vmem:[%s2318_s6 + $0x54] sm:$0xf] %vm1182_vm1, %v1373_v37  ;;  %v786_v50 = vmul.f32 %v1510_v46, %v1921_v6  ;;  %v752_v51 = vmul.f32 %v1921_v6, %v564_v47  ;;  %v888_v53 = vmax.f32 %v824_v42, 0.0  ;;  %v854_v54 = vadd.f32 %v1926_v43, %v783_v44  ;;  %v1481_v7 = vpop.f32.mrb[28].mxu0 }
 0x119   :  { %1236 = vst.msk [vmem:[%s2318_s6 + $0xd4] sm:$0xf] %vm1182_vm1, %v1405_v41  ;;  %v825_v55 = vadd.f32 %v1926_v43, %v754_v45  ;;  %v784_v56 = vmul.f32 %v1921_v6, %v692_v52  ;;  %v920_v57 = vmax.f32 %v856_v48, 0.0  ;;  %v886_v58 = vmax.f32 %v822_v49, 0.0  ;;  %v577_v13 = vpop.f32.mrb[29].mxu0 }
 0x11a   :  { %v857_v59 = vadd.f32 %v1926_v43, %v786_v50  ;;  %v823_v60 = vadd.f32 %v1926_v43, %v752_v51  ;;  %v1378_v61 = vpack.c.bf16 %v888_v53, %v888_v53  ;;  %v918_v62 = vmax.f32 %v854_v54, 0.0  ;;  %v1513_v12 = vpop.f32.mrb[28].mxu1  ;;  %v1482_v19 = vpop.f32.mrb[30].mxu0 }
 0x11b   :  { %v889_v63 = vmax.f32 %v825_v55, 0.0  ;;  %v855_v0 = vadd.f32 %v1926_v43, %v784_v56  ;;  %v1410_v1 = vpack.c.bf16 %v920_v57, %v920_v57  ;;  %v1376_v2 = vpack.c.bf16 %v886_v58, %v886_v58  ;;  %v705_v18 = vpop.f32.mrb[29].mxu1  ;;  %v580_v25 = vpop.f32.mrb[31].mxu0 }
 0x11c   :  { %v921_v4 = vmax.f32 %v857_v59, 0.0  ;;  %v887_v5 = vmax.f32 %v823_v60, 0.0  ;;  %1209 = vst.msk [vmem:[%s2318_s6 + $0x68] sm:$0xf] %vm1182_vm1, %v1378_v61  ;;  %v1408_v8 = vpack.c.bf16 %v918_v62, %v918_v62  ;;  %v757_v11 = vmul.f32 %v1481_v7, %v1921_v6  ;;  %v1514_v24 = vpop.f32.mrb[30].mxu1 }
 0x11d   :  { %v1379_v9 = vpack.c.bf16 %v889_v63, %v889_v63  ;;  %v919_v10 = vmax.f32 %v855_v0, 0.0  ;;  %1241 = vst.msk [vmem:[%s2318_s6 + $0xe8] sm:$0xf] %vm1182_vm1, %v1410_v1  ;;  %1207 = vst.msk [vmem:[%s2318_s6 + $0x60] sm:$0xf] %vm1182_vm1, %v1376_v2  ;;  %v789_v16 = vmul.f32 %v1513_v12, %v1921_v6  ;;  %v755_v17 = vmul.f32 %v1921_v6, %v577_v13  ;;  %v708_v30 = vpop.f32.mrb[31].mxu1 }
 0x11e   :  { %v1411_v14 = vpack.c.bf16 %v921_v4, %v921_v4  ;;  %v1377_v15 = vpack.c.bf16 %v887_v5, %v887_v5  ;;  %1239 = vst.msk [vmem:[%s2318_s6 + $0xe0] sm:$0xf] %vm1182_vm1, %v1408_v8  ;;  %v828_v21 = vadd.f32 %v1926_v43, %v757_v11  ;;  %v787_v22 = vmul.f32 %v1921_v6, %v705_v18 }
 0x11f   :  { %1210 = vst.msk [vmem:[%s2318_s6 + $0x6c] sm:$0xf] %vm1182_vm1, %v1379_v9  ;;  %v1409_v20 = vpack.c.bf16 %v919_v10, %v919_v10  ;;  %v758_v23 = vmul.f32 %v1482_v19, %v1921_v6  ;;  %v860_v26 = vadd.f32 %v1926_v43, %v789_v16  ;;  %v826_v27 = vadd.f32 %v1926_v43, %v755_v17 }
 0x120   :  { %1242 = vst.msk [vmem:[%s2318_s6 + $0xec] sm:$0xf] %vm1182_vm1, %v1411_v14  ;;  %1208 = vst.msk [vmem:[%s2318_s6 + $0x64] sm:$0xf] %vm1182_vm1, %v1377_v15  ;;  %v790_v28 = vmul.f32 %v1514_v24, %v1921_v6  ;;  %v756_v29 = vmul.f32 %v1921_v6, %v580_v25  ;;  %v892_v31 = vmax.f32 %v828_v21, 0.0  ;;  %v858_v32 = vadd.f32 %v1926_v43, %v787_v22 }
 0x121   :  { %1240 = vst.msk [vmem:[%s2318_s6 + $0xe4] sm:$0xf] %vm1182_vm1, %v1409_v20  ;;  %v829_v33 = vadd.f32 %v1926_v43, %v758_v23  ;;  %v788_v34 = vmul.f32 %v1921_v6, %v708_v30  ;;  %v924_v35 = vmax.f32 %v860_v26, 0.0  ;;  %v890_v36 = vmax.f32 %v826_v27, 0.0 }
 0x122   :  { %v861_v37 = vadd.f32 %v1926_v43, %v790_v28  ;;  %v827_v38 = vadd.f32 %v1926_v43, %v756_v29  ;;  %v1382_v3 = vpack.c.bf16 %v892_v31, %v892_v31  ;;  %v922_v39 = vmax.f32 %v858_v32, 0.0 }
 0x123   :  { %v893_v40 = vmax.f32 %v829_v33, 0.0  ;;  %v859_v41 = vadd.f32 %v1926_v43, %v788_v34  ;;  %v1414_v42 = vpack.c.bf16 %v924_v35, %v924_v35  ;;  %v1380_v44 = vpack.c.bf16 %v890_v36, %v890_v36 }
 0x124   :  { %v925_v45 = vmax.f32 %v861_v37, 0.0  ;;  %v891_v46 = vmax.f32 %v827_v38, 0.0  ;;  %1213 = vst.msk [vmem:[%s2318_s6 + $0x78] sm:$0xf] %vm1182_vm1, %v1382_v3  ;;  %v1412_v6 = vpack.c.bf16 %v922_v39, %v922_v39 }
 0x125   :  { %v1383_v47 = vpack.c.bf16 %v893_v40, %v893_v40  ;;  %v923_v48 = vmax.f32 %v859_v41, 0.0  ;;  %1245 = vst.msk [vmem:[%s2318_s6 + $0xf8] sm:$0xf] %vm1182_vm1, %v1414_v42  ;;  %1211 = vst.msk [vmem:[%s2318_s6 + $0x70] sm:$0xf] %vm1182_vm1, %v1380_v44 }
 0x126   :  { %v1415_v43 = vpack.c.bf16 %v925_v45, %v925_v45  ;;  %v1381_v49 = vpack.c.bf16 %v891_v46, %v891_v46  ;;  %1243 = vst.msk [vmem:[%s2318_s6 + $0xf0] sm:$0xf] %vm1182_vm1, %v1412_v6 }
 0x127   :  { %1214 = vst.msk [vmem:[%s2318_s6 + $0x7c] sm:$0xf] %vm1182_vm1, %v1383_v47  ;;  %v1413_v50 = vpack.c.bf16 %v923_v48, %v923_v48 }
 0x128   :  { %1246 = vst.msk [vmem:[%s2318_s6 + $0xfc] sm:$0xf] %vm1182_vm1, %v1415_v43  ;;  %1212 = vst.msk [vmem:[%s2318_s6 + $0x74] sm:$0xf] %vm1182_vm1, %v1381_v49 }
 0x129   :  { %1244 = vst.msk [vmem:[%s2318_s6 + $0xf4] sm:$0xf] %vm1182_vm1, %v1413_v50 }

</bundles_post_ra>
